<compile_context>
chip_gen: v5e
topology: v5e:2x2
jax: 0.10.0
libtpu: 0.0.40
codegen_flags: <defaults>
</compile_context>

<pallas_src>
import jax
import jax.numpy as jnp
from jax.experimental import pallas as pl
from jax.experimental.pallas import tpu as pltpu

LANE = 128
_SMALL_MAX_BYTES = 1 << 20        # <= 1 MiB: single ungridded full-array block
_TARGET_BLOCK_BYTES = 4 << 20     # ~4 MiB per block on the gridded path


def _round_up(a, m):
    return ((a + m - 1) // m) * m


def _tanh_kernel_native(x_ref, o_ref):
    # Native-dtype tanh (f32, or bf16 on v6e/v7x which have bf16 VPU/EUP).
    o_ref[...] = jnp.tanh(x_ref[...])


def _tanh_kernel_f32(x_ref, o_ref):
    # Upcast path: needed on v5e for bf16 (no bf16 EUP) and for fp16 etc.
    o_ref[...] = jnp.tanh(x_ref[...].astype(jnp.float32)).astype(o_ref.dtype)


def _compute_in_f32(dtype):
    if dtype == jnp.float32:
        return False
    if dtype == jnp.bfloat16:
        try:
            kind = jax.devices()[0].device_kind.lower()
        except Exception:
            kind = ""
        return "v5" in kind  # only v5e lacks the bf16 VPU/EUP path
    return True  # fp16 / other narrow floats: compute in f32


def tanh_pallas(x):
    """Elementwise tanh (forward of the Tanh module)."""
    orig_shape = x.shape

    # PyTorch's tanh promotes integer/bool inputs to floating output.
    if not jnp.issubdtype(x.dtype, jnp.floating):
        x = x.astype(jnp.float32)
    dtype = x.dtype
    itemsize = jnp.dtype(dtype).itemsize
    n = x.size
    if n == 0:
        return jnp.zeros(orig_shape, dtype)

    compute_f32 = _compute_in_f32(dtype)
    kernel = _tanh_kernel_f32 if compute_f32 else _tanh_kernel_native
    x_flat = jnp.ravel(x)

    # ---------------- Small path: one ungridded full-array VMEM block -------
    if n * itemsize <= _SMALL_MAX_BYTES:
        if n % LANE == 0:
            rows, pad = n // LANE, 0
        else:
            rows = pl.cdiv(n, LANE)
            pad = rows * LANE - n
            x_flat = jnp.pad(x_flat, (0, pad))
        x2d = x_flat.reshape(rows, LANE)

        out2d = pl.pallas_call(
            kernel,
            out_shape=jax.ShapeDtypeStruct((rows, LANE), dtype),
            in_specs=[pl.BlockSpec(memory_space=pltpu.MemorySpace.VMEM)],
            out_specs=pl.BlockSpec(memory_space=pltpu.MemorySpace.VMEM),
        )(x2d)

        out_flat = out2d.reshape(rows * LANE)
        if pad:
            out_flat = out_flat[:n]
        return out_flat.reshape(orig_shape)

    # ---------------- Large path: ragged parallel grid, ~4 MiB blocks -------
    # Sublane packing multiple: 8 for 32-bit, 16 for bf16, 32 for 8-bit.
    sub_mult = 8 * max(1, 4 // itemsize)

    # Widest lane-dense column count that divides n => no pad/slice passes.
    cols = LANE
    for c in (2048, 1024, 512, 256):
        if n % c == 0:
            cols = c
            break

    if n % cols == 0:
        rows, pad = n // cols, 0
    else:
        # Only when n is not a multiple of 128: pad by < one row (tiny copy
        # compared to the tensor; the grid itself stays ragged, no block pad).
        rows = pl.cdiv(n, cols)
        pad = rows * cols - n
        x_flat = jnp.pad(x_flat, (0, pad))
    x2d = x_flat.reshape(rows, cols)

    # Block sizing: ~4 MiB per block (count f32 bytes if the kernel upcasts,
    # so intermediate temps stay within the VMEM budget).
    eff_itemsize = 4 if compute_f32 else itemsize
    target_rows = max(
        sub_mult,
        (_TARGET_BLOCK_BYTES // (cols * eff_itemsize)) // sub_mult * sub_mult,
    )
    # Guarantee >= 2 grid steps so both v7x TensorCores get work.
    half_rows = max(sub_mult, _round_up(pl.cdiv(rows, 2), sub_mult))
    block_rows = min(target_rows, half_rows)
    grid = (pl.cdiv(rows, block_rows),)

    out2d = pl.pallas_call(
        kernel,
        out_shape=jax.ShapeDtypeStruct((rows, cols), dtype),
        grid_spec=pltpu.PrefetchScalarGridSpec(
            num_scalar_prefetch=0,
            grid=grid,
            in_specs=[pl.BlockSpec((block_rows, cols), lambda i: (i, 0))],
            out_specs=pl.BlockSpec((block_rows, cols), lambda i: (i, 0)),
        ),
        compiler_params=pltpu.CompilerParams(
            dimension_semantics=("parallel",),
            vmem_limit_bytes=32 * 1024 * 1024,
        ),
    )(x2d)

    out_flat = out2d.reshape(rows * cols)
    if pad:
        out_flat = out_flat[:n]
    return out_flat.reshape(orig_shape)


# TODO(synk): backward() (delta_network * d_tanh(input).view(-1, 1)) belongs to
# the module's custom autograd scheme, not the forward pass; only forward is
# implemented here.


if __name__ == "__main__":
    key = jax.random.PRNGKey(0)
    # NCHW activation consistent with a small conv net: batch=2, C=4, H=W=16
    x = jax.random.normal(key, (2, 4, 16, 16), dtype=jnp.float32)

    y = tanh_pallas(x)
    jax.block_until_ready(y)

    # Sanity check vs. plain JAX reference.
    y_ref = jnp.tanh(x)
    assert y.shape == x.shape and y.dtype == x.dtype
    assert jnp.max(jnp.abs(y - y_ref)) < 1e-6

    print("KERNEL_OK")
</pallas_src>

<mosaic_0001>
module attributes {stable_mosaic.version = 11 : i64} {
  func.func @_tanh_kernel_native(%arg0: memref<16x128xf32, #tpu.memory_space<vmem>>, %arg1: memref<16x128xf32, #tpu.memory_space<vmem>>) attributes {dimension_semantics = [], scalar_prefetch = 0 : i64, scratch_operands = 0 : i64, tpu.core_type = #tpu.core_type<tc>} {
    %c0 = arith.constant 0 : index
    %c0_0 = arith.constant 0 : index
    %0 = vector.load %arg0[%c0, %c0_0] : memref<16x128xf32, #tpu.memory_space<vmem>>, vector<16x128xf32>
    %1 = math.tanh %0 : vector<16x128xf32>
    %c0_1 = arith.constant 0 : index
    %c0_2 = arith.constant 0 : index
    %2 = vector.load %arg1[%c0_1, %c0_2] : memref<16x128xf32, #tpu.memory_space<vmem>>, vector<16x128xf32>
    tpu.vector_store %arg1[%c0_1, %c0_2], %1 {strides = array<i32>} : memref<16x128xf32, #tpu.memory_space<vmem>>, vector<16x128xf32>,
    return
  }
}

</mosaic_0001>

<bundles_post_ra>
// kernel: tpu_custom_call.1
= control target key start
LH: loop header
LB: loop body
LE: loop exit
PB: predicated region body
PF: predicated region fallthrough
CT: control target
= control target key end

     0   :  { %6 = vsyncpa [#allocation3], 0  ;;  %s130_s0 = inlined_call_operand.hbm [shape: f32[16,128], index: 0, kind: input, shape index: {}]   ;;  %s131_s1 = inlined_call_operand.hbm [shape: f32[16,128], index: 1, kind: output, shape index: {}]  }
   0x1   :  { %7 = vsyncpa [#allocation4], 0  ;;  %s12_s8 = sshll.u32 %s130_s0, 4  ;;  %s110_s9 = smov [#allocation2]   ;;  %s13_s8 = int_to_ptr.hbm [resolvable:$true] %s12_s8 }
   0x2   :  { %s14_s10 = sshll.u32 %s110_s9, 4  ;;  %s111_s11 = smov 128   ;;  %s15_s10 = int_to_ptr.vmem [resolvable:$true] %s14_s10 }
   0x3   :  { %s112_s12 = smov 8  }
   0x4   :  { %20 = dma.hbm_to_vmem [thread:$0]  %s13_s8, 256, %s15_s10, [#allocation3], %s111_s11, %s111_s11, %s112_s12  }
   0x5   :  { %106 = dma.done.wait [#allocation3], 256  }
   0x6   :  { %107 = vsyncadd [#allocation3], 4294967040  ;;  %v25_v0 = vld [vmem:[#allocation2] sm:$0xff]  ;;  %v26_v1 = vld [vmem:[#allocation2 + $0x8] sm:$0xff]  ;;  %s113_s13 = smov [#allocation5]   ;;  %s37_s17 = sshll.u32 %s131_s1, 4  ;;  %s38_s17 = int_to_ptr.hbm [resolvable:$true] %s37_s17 }
   0x7   :  { %54 = vtanh.f32 %v25_v0  ;;  %s35_s14 = sshll.u32 %s113_s13, 4  ;;  %s36_s14 = int_to_ptr.vmem [resolvable:$true] %s35_s14 }
   0x8   :  { %56 = vtanh.f32 %v26_v1 }
   0xd   :  { %v55_v2 = vpop.eup %54 }
   0xe   :  { %v57_v3 = vpop.eup %56  ;;  %29 = vst [vmem:[#allocation5] sm:$0xff] %v55_v2 }
   0xf   :  { %30 = vst [vmem:[#allocation5 + $0x8] sm:$0xff] %v57_v3 }
  0x10   :  { %43 = dma.vmem_to_hbm [thread:$0]  %s36_s14, 256, %s38_s17, [#allocation4], %s111_s11, %s111_s11, %s112_s12  }
  0x11   :  { %108 = dma.done.wait [#allocation4], 256  }
  0x12   :  { %109 = vsyncadd [#allocation4], 4294967040 }
  0x13   :  { %48 = vsyncpa [#allocation3], 1 }
  0x14   :  { %49 = vsyncpa [#allocation4], 1 }

</bundles_post_ra>
